<compile_context>
chip_gen: v7x
topology: tpu7x:2x2x1
jax: 0.10.0
libtpu: 0.0.40
codegen_flags: <defaults>
</compile_context>

<pallas_src>
import math

import jax
import jax.numpy as jnp
from jax.experimental import pallas as pl
from jax.experimental.pallas import tpu as pltpu

LN_EPS = 1e-5                 # torch.nn.LayerNorm default
MXU_DTYPE = jnp.bfloat16      # MXU input dtype (f32 accumulation); jnp.float32 for full parity
MAX_ROW_TILE = 1024           # rows per grid step upper bound (multiple of 8)
MIN_GRID_STEPS = 8            # keep >= 4 steps per TensorCore on v7x (2 TCs on parallel axis)


def _round_up(a, b):
    return -(-a // b) * b


def _pick_row_tile(rows):
    """Biggest tile <= MAX_ROW_TILE keeping >= MIN_GRID_STEPS grid steps (mult of 8)."""
    if rows <= 8:
        return max(rows, 1)
    tile = _round_up(pl.cdiv(rows, MIN_GRID_STEPS), 8)
    return min(MAX_ROW_TILE, tile)


def _vmem_limit_bytes():
    """~75% of physical per-core VMEM: ~96-100 MiB on v5e/v6e, ~48 MiB on v7x."""
    try:
        cap = int(pltpu.get_tpu_info().vmem_capacity_bytes)
    except Exception:
        cap = 64 * 1024 * 1024  # conservative fallback
    return int(min(0.75 * cap, 100 * 1024 * 1024))


def _const_spec(shape):
    """BlockSpec for a grid-constant operand: same block every step, single-buffered."""
    idx = lambda i: (0,) * len(shape)
    try:
        return pl.BlockSpec(shape, idx, pipeline_mode=pl.Buffered(1))
    except TypeError:  # older jax without pipeline_mode kwarg
        return pl.BlockSpec(shape, idx)


# ----------------------------- fused kernel ---------------------------------
def _make_kernel(has_mask):
    def kernel(*refs):
        if has_mask:
            (x_ref, lnw_ref, lnb_ref, w1_ref, b1_ref, w2_ref, b2_ref,
             mask_ref, o_ref) = refs
        else:
            (x_ref, lnw_ref, lnb_ref, w1_ref, b1_ref, w2_ref, b2_ref,
             o_ref) = refs
            mask_ref = None

        # LayerNorm in f32; single pass over x (one fewer cross-lane reduction).
        x = x_ref[...].astype(jnp.float32)
        mean = jnp.mean(x, axis=-1, keepdims=True)
        mean_sq = jnp.mean(x * x, axis=-1, keepdims=True)
        var = jnp.maximum(mean_sq - mean * mean, 0.0)
        y = (x - mean) * jax.lax.rsqrt(var + LN_EPS)
        y = y * lnw_ref[...].astype(jnp.float32) + lnb_ref[...].astype(jnp.float32)

        # Linear1 + bias + ReLU, fused into a single bf16 hidden intermediate.
        # (K = C_m only half-fills v6e/v7x's 256-deep MXU -- model-fixed; the
        #  real lever here is HBM bytes / tile size, not MXU micro-tuning.)
        h = jnp.dot(y.astype(w1_ref.dtype), w1_ref[...],
                    preferred_element_type=jnp.float32)
        h = jnp.maximum(h + b1_ref[...].astype(jnp.float32), 0.0).astype(w2_ref.dtype)

        # Linear2 + bias (+ mask).
        out = jnp.dot(h, w2_ref[...], preferred_element_type=jnp.float32)
        out = out + b2_ref[...].astype(jnp.float32)
        if mask_ref is not None:
            out = out * mask_ref[...].astype(jnp.float32)
        o_ref[...] = out.astype(o_ref.dtype)

    return kernel


# ------------------------------- wrapper -------------------------------------
def msa_transition(m, mask, params, *, mxu_dtype=MXU_DTYPE):
    """m: [*, N_seq, N_res, C_m]; mask: [*, N_seq, N_res] or None."""
    # TODO(synk): chunk_size / _chunk chunked-inference path is pure Python control
    # flow (memory bounding); the row-tiled grid below serves the same purpose.
    c_m = m.shape[-1]
    hidden = params["w1"].shape[1]
    lead = m.shape[:-1]
    rows = math.prod(lead)

    has_mask = mask is not None

    x = m.reshape(rows, c_m)                     # free reshape (trailing dim kept)

    row_tile = _pick_row_tile(rows)
    grid = (pl.cdiv(rows, row_tile),)            # ragged tail handled by Pallas; no jnp.pad

    # Weights pre-cast once in HBM -> half the DMA traffic and VMEM footprint.
    w1 = params["w1"].astype(mxu_dtype)
    w2 = params["w2"].astype(mxu_dtype)

    tiled = lambda i: (i, 0)                     # row-tiled operands

    in_specs = [
        pl.BlockSpec((row_tile, c_m), tiled),    # x
        _const_spec((1, c_m)),                   # ln weight
        _const_spec((1, c_m)),                   # ln bias
        _const_spec((c_m, hidden)),              # w1
        _const_spec((1, hidden)),                # b1
        _const_spec((hidden, c_m)),              # w2
        _const_spec((1, c_m)),                   # b2
    ]
    inputs = [
        x,
        params["ln_w"].reshape(1, c_m), params["ln_b"].reshape(1, c_m),
        w1, params["b1"].reshape(1, hidden),
        w2, params["b2"].reshape(1, c_m),
    ]
    if has_mask:
        mk = mask.reshape(rows, 1).astype(m.dtype)
        in_specs.append(pl.BlockSpec((row_tile, 1), tiled))
        inputs.append(mk)

    out = pl.pallas_call(
        _make_kernel(has_mask),
        out_shape=jax.ShapeDtypeStruct((rows, c_m), m.dtype),
        grid=grid,
        in_specs=in_specs,
        out_specs=pl.BlockSpec((row_tile, c_m), tiled),
        compiler_params=pltpu.CompilerParams(
            dimension_semantics=("parallel",),   # v7x: shard row-grid across 2 TCs
            vmem_limit_bytes=_vmem_limit_bytes()),
    )(*inputs)

    return out.reshape(*lead, c_m)


# --------------------------- pure-JAX reference -------------------------------
def msa_transition_ref(m, mask, params):
    mu = jnp.mean(m, axis=-1, keepdims=True)
    var = jnp.mean(jnp.square(m - mu), axis=-1, keepdims=True)
    y = (m - mu) * jax.lax.rsqrt(var + LN_EPS) * params["ln_w"] + params["ln_b"]
    h = jnp.matmul(y, params["w1"], precision=jax.lax.Precision.HIGHEST) + params["b1"]
    h = jnp.maximum(h, 0.0)
    out = jnp.matmul(h, params["w2"], precision=jax.lax.Precision.HIGHEST) + params["b2"]
    if mask is None:
        return out
    return out * mask[..., None]


# --------------------------------- main ---------------------------------------
if __name__ == "__main__":
    N_SEQ, N_RES, C_M, N_FACTOR = 8, 64, 128, 4   # lane-dense: C_m=128, hidden=512
    HIDDEN = N_FACTOR * C_M

    key = jax.random.PRNGKey(0)
    k_m, k_w1, k_b1, k_w2, k_b2 = jax.random.split(key, 5)

    m = jax.random.normal(k_m, (N_SEQ, N_RES, C_M), jnp.float32)
    msa_mask = jnp.ones((N_SEQ, N_RES), jnp.float32).at[:, -3:].set(0.0)

    params = dict(
        ln_w=jnp.ones((C_M,), jnp.float32),
        ln_b=jnp.zeros((C_M,), jnp.float32),
        w1=0.02 * jax.random.normal(k_w1, (C_M, HIDDEN), jnp.float32),
        b1=0.02 * jax.random.normal(k_b1, (HIDDEN,), jnp.float32),
        w2=0.02 * jax.random.normal(k_w2, (HIDDEN, C_M), jnp.float32),
        b2=0.02 * jax.random.normal(k_b2, (C_M,), jnp.float32),
    )

    # Masked path (f32 activations).
    fwd = jax.jit(lambda m_, mk_: msa_transition(m_, mk_, params))
    out = fwd(m, msa_mask)
    jax.block_until_ready(out)

    ref = msa_transition_ref(m, msa_mask, params)
    assert out.shape == m.shape and out.dtype == m.dtype
    assert bool(jnp.all(jnp.isfinite(out)))
    max_err = float(jnp.max(jnp.abs(out - ref)))
    assert max_err < 1e-2, f"max abs err vs reference: {max_err}"
    # Masked positions must be exactly zero (mask applied after linear_2).
    assert float(jnp.max(jnp.abs(out[:, -3:, :]))) == 0.0

    # Specialized mask=None path (no mask operand, no final multiply).
    fwd_nomask = jax.jit(lambda m_: msa_transition(m_, None, params))
    out_nm = fwd_nomask(m)
    jax.block_until_ready(out_nm)
    ref_nm = msa_transition_ref(m, None, params)
    err_nm = float(jnp.max(jnp.abs(out_nm - ref_nm)))
    assert err_nm < 1e-2, f"max abs err (no mask) vs reference: {err_nm}"

    # bf16 activation smoke test (halves HBM traffic on mem-bound v6e/v7x).
    out_bf16 = jax.jit(lambda m_, mk_: msa_transition(m_, mk_, params))(
        m.astype(jnp.bfloat16), msa_mask)
    jax.block_until_ready(out_bf16)
    assert out_bf16.dtype == jnp.bfloat16 and out_bf16.shape == m.shape
    assert bool(jnp.all(jnp.isfinite(out_bf16.astype(jnp.float32))))

    print("KERNEL_OK")
</pallas_src>

<mosaic_0001>
module attributes {stable_mosaic.version = 11 : i64} {
  func.func @kernel(%arg0: i32, %arg1: memref<64x128xf32, #tpu.memory_space<vmem>>, %arg2: memref<1x128xf32, #tpu.memory_space<vmem>>, %arg3: memref<1x128xf32, #tpu.memory_space<vmem>>, %arg4: memref<128x512xbf16, #tpu.memory_space<vmem>>, %arg5: memref<1x512xf32, #tpu.memory_space<vmem>>, %arg6: memref<512x128xbf16, #tpu.memory_space<vmem>>, %arg7: memref<1x128xf32, #tpu.memory_space<vmem>>, %arg8: memref<64x1xf32, #tpu.memory_space<vmem>>, %arg9: memref<64x128xf32, #tpu.memory_space<vmem>>) attributes {dimension_semantics = [#tpu.dimension_semantics<parallel>], iteration_bounds = array<i64: 8>, scalar_prefetch = 0 : i64, scratch_operands = 0 : i64, tpu.core_type = #tpu.core_type<tc>, window_params = [{transform_indices = @transform_0, window_bounds = array<i64: 64, 128>}, {pipeline_mode = #tpu.pipeline_mode<synchronous>, transform_indices = @transform_1, window_bounds = array<i64: 1, 128>}, {pipeline_mode = #tpu.pipeline_mode<synchronous>, transform_indices = @transform_2, window_bounds = array<i64: 1, 128>}, {pipeline_mode = #tpu.pipeline_mode<synchronous>, transform_indices = @transform_3, window_bounds = array<i64: 128, 512>}, {pipeline_mode = #tpu.pipeline_mode<synchronous>, transform_indices = @transform_4, window_bounds = array<i64: 1, 512>}, {pipeline_mode = #tpu.pipeline_mode<synchronous>, transform_indices = @transform_5, window_bounds = array<i64: 512, 128>}, {pipeline_mode = #tpu.pipeline_mode<synchronous>, transform_indices = @transform_6, window_bounds = array<i64: 1, 128>}, {transform_indices = @transform_7, window_bounds = array<i64: 64, 1>}, {transform_indices = @transform_8, window_bounds = array<i64: 64, 128>}]} {
    %c0 = arith.constant 0 : index
    %c0_0 = arith.constant 0 : index
    %0 = vector.load %arg1[%c0, %c0_0] : memref<64x128xf32, #tpu.memory_space<vmem>>, vector<64x128xf32>
    %cst = arith.constant dense<0.000000e+00> : vector<64xf32>
    %1 = vector.multi_reduction <add>, %0, %cst [1] : vector<64x128xf32> to vector<64xf32>
    %2 = vector.shape_cast %1 : vector<64xf32> to vector<64x1xf32>
    %cst_1 = arith.constant 1.280000e+02 : f32
    %3 = vector.broadcast %cst_1 : f32 to vector<64x1xf32>
    %4 = arith.divf %2, %3 : vector<64x1xf32>
    %5 = arith.mulf %0, %0 : vector<64x128xf32>
    %cst_2 = arith.constant dense<0.000000e+00> : vector<64xf32>
    %6 = vector.multi_reduction <add>, %5, %cst_2 [1] : vector<64x128xf32> to vector<64xf32>
    %7 = vector.shape_cast %6 : vector<64xf32> to vector<64x1xf32>
    %cst_3 = arith.constant 1.280000e+02 : f32
    %8 = vector.broadcast %cst_3 : f32 to vector<64x1xf32>
    %9 = arith.divf %7, %8 : vector<64x1xf32>
    %10 = arith.mulf %4, %4 : vector<64x1xf32>
    %11 = arith.subf %9, %10 : vector<64x1xf32>
    %cst_4 = arith.constant 0.000000e+00 : f32
    %12 = vector.broadcast %cst_4 : f32 to vector<64x1xf32>
    %13 = arith.maximumf %11, %12 : vector<64x1xf32>
    %14 = vector.broadcast %4 : vector<64x1xf32> to vector<64x128xf32>
    %15 = arith.subf %0, %14 : vector<64x128xf32>
    %cst_5 = arith.constant 9.99999974E-6 : f32
    %16 = vector.broadcast %cst_5 : f32 to vector<64x1xf32>
    %17 = arith.addf %13, %16 : vector<64x1xf32>
    %18 = math.rsqrt %17 : vector<64x1xf32>
    %19 = vector.broadcast %18 : vector<64x1xf32> to vector<64x128xf32>
    %20 = arith.mulf %15, %19 : vector<64x128xf32>
    %c0_6 = arith.constant 0 : index
    %c0_7 = arith.constant 0 : index
    %21 = vector.load %arg2[%c0_6, %c0_7] : memref<1x128xf32, #tpu.memory_space<vmem>>, vector<1x128xf32>
    %22 = vector.broadcast %21 : vector<1x128xf32> to vector<64x128xf32>
    %23 = arith.mulf %20, %22 : vector<64x128xf32>
    %c0_8 = arith.constant 0 : index
    %c0_9 = arith.constant 0 : index
    %24 = vector.load %arg3[%c0_8, %c0_9] : memref<1x128xf32, #tpu.memory_space<vmem>>, vector<1x128xf32>
    %25 = vector.broadcast %24 : vector<1x128xf32> to vector<64x128xf32>
    %26 = arith.addf %23, %25 : vector<64x128xf32>
    %27 = arith.truncf %26 : vector<64x128xf32> to vector<64x128xbf16>
    %c0_10 = arith.constant 0 : index
    %c0_11 = arith.constant 0 : index
    %28 = vector.load %arg4[%c0_10, %c0_11] : memref<128x512xbf16, #tpu.memory_space<vmem>>, vector<128x512xbf16>
    %cst_12 = arith.constant dense<0.000000e+00> : vector<64x512xf32>
    %29 = tpu.matmul %27, %28, %cst_12 {dimension_numbers = #tpu.dot_dimension_numbers<[1], [0], [0], [1], [0, 0, 1, 1], [], []>} : vector<64x128xbf16>, vector<128x512xbf16>, vector<64x512xf32> -> vector<64x512xf32>
    %c0_13 = arith.constant 0 : index
    %c0_14 = arith.constant 0 : index
    %30 = vector.load %arg5[%c0_13, %c0_14] : memref<1x512xf32, #tpu.memory_space<vmem>>, vector<1x512xf32>
    %31 = vector.broadcast %30 : vector<1x512xf32> to vector<64x512xf32>
    %32 = arith.addf %29, %31 : vector<64x512xf32>
    %cst_15 = arith.constant 0.000000e+00 : f32
    %33 = vector.broadcast %cst_15 : f32 to vector<64x512xf32>
    %34 = arith.maximumf %32, %33 : vector<64x512xf32>
    %35 = arith.truncf %34 : vector<64x512xf32> to vector<64x512xbf16>
    %c0_16 = arith.constant 0 : index
    %c0_17 = arith.constant 0 : index
    %36 = vector.load %arg6[%c0_16, %c0_17] : memref<512x128xbf16, #tpu.memory_space<vmem>>, vector<512x128xbf16>
    %cst_18 = arith.constant dense<0.000000e+00> : vector<64x128xf32>
    %37 = tpu.matmul %35, %36, %cst_18 {dimension_numbers = #tpu.dot_dimension_numbers<[1], [0], [0], [1], [0, 0, 1, 1], [], []>} : vector<64x512xbf16>, vector<512x128xbf16>, vector<64x128xf32> -> vector<64x128xf32>
    %c0_19 = arith.constant 0 : index
    %c0_20 = arith.constant 0 : index
    %38 = vector.load %arg7[%c0_19, %c0_20] : memref<1x128xf32, #tpu.memory_space<vmem>>, vector<1x128xf32>
    %39 = vector.broadcast %38 : vector<1x128xf32> to vector<64x128xf32>
    %40 = arith.addf %37, %39 : vector<64x128xf32>
    %c0_21 = arith.constant 0 : index
    %c0_22 = arith.constant 0 : index
    %41 = vector.load %arg8[%c0_21, %c0_22] : memref<64x1xf32, #tpu.memory_space<vmem>>, vector<64x1xf32>
    %42 = vector.broadcast %41 : vector<64x1xf32> to vector<64x128xf32>
    %43 = arith.mulf %40, %42 : vector<64x128xf32>
    %c0_23 = arith.constant 0 : index
    %c0_24 = arith.constant 0 : index
    %44 = vector.load %arg9[%c0_23, %c0_24] : memref<64x128xf32, #tpu.memory_space<vmem>>, vector<64x128xf32>
    tpu.vector_store %arg9[%c0_23, %c0_24], %43 {strides = array<i32>} : memref<64x128xf32, #tpu.memory_space<vmem>>, vector<64x128xf32>,
    return
  }
  func.func @transform_0(%arg0: i32) -> (i32, i32) {
    %c0_i32 = arith.constant 0 : i32
    %c0_i32_0 = arith.constant 0 : i32
    return %arg0, %c0_i32 : i32, i32
  }
  func.func @transform_1(%arg0: i32) -> (i32, i32) {
    %c0_i32 = arith.constant 0 : i32
    %c0_i32_0 = arith.constant 0 : i32
    %c0_i32_1 = arith.constant 0 : i32
    return %c0_i32, %c0_i32_0 : i32, i32
  }
  func.func @transform_2(%arg0: i32) -> (i32, i32) {
    %c0_i32 = arith.constant 0 : i32
    %c0_i32_0 = arith.constant 0 : i32
    %c0_i32_1 = arith.constant 0 : i32
    return %c0_i32, %c0_i32_0 : i32, i32
  }
  func.func @transform_3(%arg0: i32) -> (i32, i32) {
    %c0_i32 = arith.constant 0 : i32
    %c0_i32_0 = arith.constant 0 : i32
    %c0_i32_1 = arith.constant 0 : i32
    return %c0_i32, %c0_i32_0 : i32, i32
  }
  func.func @transform_4(%arg0: i32) -> (i32, i32) {
    %c0_i32 = arith.constant 0 : i32
    %c0_i32_0 = arith.constant 0 : i32
    %c0_i32_1 = arith.constant 0 : i32
    return %c0_i32, %c0_i32_0 : i32, i32
  }
  func.func @transform_5(%arg0: i32) -> (i32, i32) {
    %c0_i32 = arith.constant 0 : i32
    %c0_i32_0 = arith.constant 0 : i32
    %c0_i32_1 = arith.constant 0 : i32
    return %c0_i32, %c0_i32_0 : i32, i32
  }
  func.func @transform_6(%arg0: i32) -> (i32, i32) {
    %c0_i32 = arith.constant 0 : i32
    %c0_i32_0 = arith.constant 0 : i32
    %c0_i32_1 = arith.constant 0 : i32
    return %c0_i32, %c0_i32_0 : i32, i32
  }
  func.func @transform_7(%arg0: i32) -> (i32, i32) {
    %c0_i32 = arith.constant 0 : i32
    %c0_i32_0 = arith.constant 0 : i32
    return %arg0, %c0_i32 : i32, i32
  }
  func.func @transform_8(%arg0: i32) -> (i32, i32) {
    %c0_i32 = arith.constant 0 : i32
    %c0_i32_0 = arith.constant 0 : i32
    return %arg0, %c0_i32 : i32, i32
  }
}

</mosaic_0001>

<bundles_post_ra>
// kernel: _lambda_.1
= control target key start
LH: loop header
LB: loop body
LE: loop exit
PB: predicated region body
PF: predicated region fallthrough
CT: control target
= control target key end

     0   :  { %13 = vsyncpa [#allocation3], 0  ;;  %s2352_s0 = inlined_call_operand.vmem [shape: f32[512,128], index: 0, kind: input, shape index: {}]   ;;  %s2353_s1 = inlined_call_operand.vmem [shape: f32[1,128], index: 1, kind: input, shape index: {}]   ;;  %s2354_s2 = inlined_call_operand.vmem [shape: f32[1,128], index: 2, kind: input, shape index: {}]   ;;  %s2355_s3 = inlined_call_operand.vmem [shape: bf16[128,512], index: 3, kind: input, shape index: {}]   ;;  %s2356_s4 = inlined_call_operand.vmem [shape: f32[1,512], index: 4, kind: input, shape index: {}]   ;;  %s2357_s5 = inlined_call_operand.vmem [shape: bf16[512,128], index: 5, kind: input, shape index: {}]   ;;  %s2358_s6 = inlined_call_operand.vmem [shape: f32[1,128], index: 6, kind: input, shape index: {}]   ;;  %s2359_s7 = inlined_call_operand.vmem [shape: f32[512,1], index: 7, kind: input, shape index: {}]   ;;  %s2360_s8 = inlined_call_operand.hbm [shape: f32[512,128], index: 8, kind: output, shape index: {}]  }
   0x1   :  { %15 = vsyncpa [#allocation3 + $0x1], 0  ;;  %s1853_s27 = smov 0   ;;  %s1855_s28 = smov 0  }
   0x2   :  { %s1857_s29 = smov 0   ;;  %s1859_s30 = smov 0  }
   0x3 LB: > { %s1874_s9 = sadd.s32 4294967295, %s1802_s30   ;;  %s1438_s10 = sadd.s32 4294967294, %s1802_s30   ;;  %s1802_s30 = sphi %s1859_s30, %s2366_s30   ;;  %s1798_s29 = sphi %s1857_s29, %s2365_s29   ;;  %s1794_s28 = sphi %s1855_s28, %s2364_s28   ;;  %s1790_s27 = sphi %s1853_s27, %s2363_s27  }
   0x4   : > { %s1878_s11 = sadd.s32 1, %s1802_s30   ;;  %s206_s12 = sadd.s32 1, %s1798_s29 }
   0x5   : > { %s203_s13 = ssub.s32 %s1802_s30, %s1878_s11  ;;  %p216_p0 = scmp.ne.s32.totalorder %s1798_s29, %s1794_s28 }
   0x6   : > { %p204_p1 = scmp.eq.s32.totalorder %s203_s13, 0  ;;  %p217_p2 = scmp.eq.s32.totalorder %s1874_s9, 7 }
   0x7   : > { %p222_p3 = scmp.ne.s32.totalorder %s1794_s28, %s1790_s27  ;;  %p223_p4 = scmp.eq.s32.totalorder %s1438_s10, 7 }
   0x8   : > { %s1889_s14 = scalar_select %p204_p1, %s1798_s29, %s206_s12  }
   0x9   : > { %p1891_p5 = por %p217_p2, %p216_p0  ;;  %p1895_p6 = por %p223_p4, %p222_p3 }
   0xa   : > { %p1441_p7 = scmp.ge.s32.totalorder %s1802_s30, 1  ;;  %p277_p8 = scmp.lt.s32.totalorder %s1802_s30, 9 }
   0xc   : > { %p278_p9 = pnand %p1441_p7, %p277_p8 }
   0xd   : > { %s1443_s17 = sshll.u32 (!%p278_p9), %s1874_s9, 3  ;;  %v1644_v10 = vld [vmem:[%s2355_s3 + $0x4] ss:$16 sps:$4 sm:$0xff] (!%p278_p9)   ;;  %v1646_v11 = vld [vmem:[%s2355_s3 + $0xc] ss:$16 sps:$4 sm:$0xff] (!%p278_p9)   ;;  %v1804_v48 = vmov (!%p278_p9), 0  }
   0xe   : > { %281 = sbr.rel (%p278_p9) target bundleno = 684 (0x2ac), region = 52  ;;  %p317_p10 = scmp.lt.s32.totalorder (!%p278_p9), %s1443_s17, 63  ;;  %v1648_v12 = vld [vmem:[%s2355_s3] ss:$16 sps:$4 sm:$0xff] (!%p278_p9)   ;;  %v1649_v13 = vld [vmem:[%s2355_s3 + $0x8] ss:$16 sps:$4 sm:$0xff] (!%p278_p9)   ;;  %699 = vmatprep.subr.bf16.mxu0 (!%p278_p9), %v1644_v10  ;;  %772 = vmatprep.subr.bf16.mxu1 (!%p278_p9), %v1646_v11 }
   0xf   : > { %700 = vmatpush1.bf16.msra.mxu0 (!%p278_p9), %v1648_v12  ;;  %773 = vmatpush1.bf16.msra.mxu1 (!%p278_p9), %v1649_v13  ;;  %v1650_v15 = vld [vmem:[%s2355_s3 + $0x24] ss:$16 sps:$4 sm:$0xff] (!%p278_p9)   ;;  %v1652_v16 = vld [vmem:[%s2355_s3 + $0x2c] ss:$16 sps:$4 sm:$0xff] (!%p278_p9)   ;;  %v1654_v18 = vld [vmem:[%s2355_s3 + $0x20] ss:$16 sps:$4 sm:$0xff] (!%p278_p9)  }
  0x10   : > { %v1655_v19 = vld [vmem:[%s2355_s3 + $0x28] ss:$16 sps:$4 sm:$0xff] (!%p278_p9)   ;;  %701 = vmatprep.subr.bf16.mxu0 (!%p278_p9), %v1650_v15  ;;  %774 = vmatprep.subr.bf16.mxu1 (!%p278_p9), %v1652_v16  ;;  %v1656_v22 = vld [vmem:[%s2355_s3 + $0x44] ss:$16 sps:$4 sm:$0xff] (!%p278_p9)   ;;  %v1658_v23 = vld [vmem:[%s2355_s3 + $0x4c] ss:$16 sps:$4 sm:$0xff] (!%p278_p9)  }
  0x11   : > { %v1660_v24 = vld [vmem:[%s2355_s3 + $0x40] ss:$16 sps:$4 sm:$0xff] (!%p278_p9)   ;;  %v1661_v25 = vld [vmem:[%s2355_s3 + $0x48] ss:$16 sps:$4 sm:$0xff] (!%p278_p9)   ;;  %v1662_v28 = vld [vmem:[%s2355_s3 + $0x64] ss:$16 sps:$4 sm:$0xff] (!%p278_p9)   ;;  %731 = vmatprep.mubr.bf16.mxu0 (!%p278_p9), %v1804_v48  ;;  %804 = vmatprep.mubr.bf16.mxu1 (!%p278_p9), %v1804_v48 }
  0x12   : > { %v1664_v29 = vld [vmem:[%s2355_s3 + $0x6c] ss:$16 sps:$4 sm:$0xff] (!%p278_p9)   ;;  %v1666_v30 = vld [vmem:[%s2355_s3 + $0x60] ss:$16 sps:$4 sm:$0xff] (!%p278_p9)   ;;  %v1667_v31 = vld [vmem:[%s2355_s3 + $0x68] ss:$16 sps:$4 sm:$0xff] (!%p278_p9)   ;;  %1643 = vset.pattern.permute.xlu1 (!%p278_p9), %v1804_v48  ;;  %1642 = vset.pattern.permute.xlu0 (!%p278_p9), %v1804_v48 }
  0x13   : > { %702 = vmatpush1.bf16.msra.mxu0 (!%p278_p9), %v1654_v18  ;;  %775 = vmatpush1.bf16.msra.mxu1 (!%p278_p9), %v1655_v19  ;;  %v1668_v32 = vld [vmem:[%s2355_s3 + $0x84] ss:$16 sps:$4 sm:$0xff] (!%p278_p9)   ;;  %v1670_v33 = vld [vmem:[%s2355_s3 + $0x8c] ss:$16 sps:$4 sm:$0xff] (!%p278_p9)   ;;  %v1672_v34 = vld [vmem:[%s2355_s3 + $0x80] ss:$16 sps:$4 sm:$0xff] (!%p278_p9)  }
  0x14   : > { %703 = vmatprep.subr.bf16.mxu0 (!%p278_p9), %v1656_v22  ;;  %776 = vmatprep.subr.bf16.mxu1 (!%p278_p9), %v1658_v23  ;;  %v1673_v35 = vld [vmem:[%s2355_s3 + $0x88] ss:$16 sps:$4 sm:$0xff] (!%p278_p9)   ;;  %v1674_v36 = vld [vmem:[%s2355_s3 + $0xa4] ss:$16 sps:$4 sm:$0xff] (!%p278_p9)   ;;  %v1676_v37 = vld [vmem:[%s2355_s3 + $0xac] ss:$16 sps:$4 sm:$0xff] (!%p278_p9)  }
  0x15   : > { %s2368_s17 = smov (!%p317_p10, %s1443_s17), 63  ;;  %v1678_v38 = vld [vmem:[%s2355_s3 + $0xa0] ss:$16 sps:$4 sm:$0xff]   ;;  %v1679_v39 = vld [vmem:[%s2355_s3 + $0xa8] ss:$16 sps:$4 sm:$0xff]   ;;  %s313_s12 = sand.u32 1, %s1794_s28  }
  0x16   : > { %s1444_s18 = sshll.u32 %s2368_s17, 3  ;;  %v1680_v40 = vld [vmem:[%s2355_s3 + $0xc4] ss:$16 sps:$4 sm:$0xff]   ;;  %v1682_v41 = vld [vmem:[%s2355_s3 + $0xcc] ss:$16 sps:$4 sm:$0xff]   ;;  %s1442_s13 = sshll.u32 %s313_s12, 6 }
  0x17   : > { %s1910_s21 = scalar_lea.vmem %s2352_s0, %s1444_s18  ;;  %704 = vmatpush1.bf16.msra.mxu0 %v1660_v24  ;;  %777 = vmatpush1.bf16.msra.mxu1 %v1661_v25  ;;  %v1684_v42 = vld [vmem:[%s2355_s3 + $0xc0] ss:$16 sps:$4 sm:$0xff]   ;;  %v1685_v43 = vld [vmem:[%s2355_s3 + $0xc8] ss:$16 sps:$4 sm:$0xff]   ;;  %v1686_v44 = vld [vmem:[%s2355_s3 + $0xe4] ss:$16 sps:$4 sm:$0xff]  }
  0x18   : > { %v1913_v0 = vld [vmem:[%s1910_s21] sm:$0xff]  ;;  %v1916_v1 = vld [vmem:[%s1910_s21 + $0x8] sm:$0xff]  ;;  %v1924_v4 = vld [vmem:[%s1910_s21 + $0x10] sm:$0xff]  ;;  %705 = vmatprep.subr.bf16.mxu0 %v1662_v28  ;;  %778 = vmatprep.subr.bf16.mxu1 %v1664_v29  ;;  %s2284_s19 = scalar_lea.vmem [#allocation2], %s1442_s13  ;;  %s1519_s20 = sshll.u32 %s1874_s9, 10 }
  0x19   : > { %338 = vadd.xlane.f32.xlu0 %v1913_v0  ;;  %v363_v2 = vmul.f32 %v1913_v0, %v1913_v0  ;;  %v364_v3 = vmul.f32 %v1916_v1, %v1916_v1  ;;  %v1928_v5 = vld [vmem:[%s1910_s21 + $0x18] sm:$0xff]  ;;  %v365_v6 = vmul.f32 %v1924_v4, %v1924_v4  ;;  %v1937_v8 = vld [vmem:[%s1910_s21 + $0x20] sm:$0xff]  ;;  %v1940_v9 = vld [vmem:[%s1910_s21 + $0x28] sm:$0xff]  ;;  %s1364_s22 = sshll.u32 %s2284_s19, 4  ;;  %s2303_s25 = scalar_lea.hbm %s2360_s8, %s1519_s20  ;;  %s2305_s22 = int_to_ptr.vmem [resolvable:$true] %s1364_s22 }
  0x1a   : > { %v366_v7 = vmul.f32 %v1928_v5, %v1928_v5  ;;  %v367_v14 = vmul.f32 %v1937_v8, %v1937_v8  ;;  %v368_v17 = vmul.f32 %v1940_v9, %v1940_v9  ;;  %v1973_v20 = vld [vmem:[%s1910_s21 + $0x30] sm:$0xff]  ;;  %v1976_v21 = vld [vmem:[%s1910_s21 + $0x38] sm:$0xff]  ;;  %v1692_v49 = vld [vmem:[%s2357_s5 + $0x40] sm:$0xff]   ;;  %s326_s21 = scalar_lea.vmem %s2359_s7, %s1444_s18  ;;  %s1740_s9 = scalar_lea.vmem %s2305_s22, 1024 }
  0x1b   : > { %371 = vadd.xlane.f32.xlu1 %v363_v2  ;;  %v369_v26 = vmul.f32 %v1973_v20, %v1973_v20  ;;  %v370_v27 = vmul.f32 %v1976_v21, %v1976_v21  ;;  %706 = vmatpush1.bf16.msra.mxu0 %v1666_v30  ;;  %v1688_v45 = vld [vmem:[%s2355_s3 + $0xec] ss:$16 sps:$4 sm:$0xff]   ;;  %v1690_v46 = vld [vmem:[%s2355_s3 + $0xe0] ss:$16 sps:$4 sm:$0xff]   ;;  %v1691_v47 = vld [vmem:[%s2355_s3 + $0xe8] ss:$16 sps:$4 sm:$0xff]   ;;  %p1741_p11 = scmp.ne.s32.totalorder %s2305_s22, %s1740_s9 }
  0x1c   : > { %779 = vmatpush1.bf16.msra.mxu1 %v1667_v31  ;;  %707 = vmatprep.subr.bf16.mxu0 %v1668_v32  ;;  %v1694_v50 = vld [vmem:[%s2357_s5 + $0xc0] sm:$0xff]   ;;  %s1805_s17 = smov [#allocation2]  }
  0x1d   : > { %340 = vadd.xlane.f32.xlu0 %v1916_v1  ;;  %780 = vmatprep.subr.bf16.mxu1 %v1670_v33  ;;  %p1742_p12 = pnand %p1741_p11, %p1891_p5  ;;  %s1744_s18 = sshll.u32 %s1805_s17, 4  ;;  %s1745_s18 = int_to_ptr.vmem [resolvable:$false] %s1744_s18 }
  0x1e   : > { %s1746_s26 = scalar_lea.vmem %s1745_s18, 2048  ;;  %p1747_p0 = scmp.lt.s32.totalorder %s2305_s22, %s1745_s18 }
  0x1f   : > { %373 = vadd.xlane.f32.xlu1 %v364_v3  ;;  %708 = vmatpush1.bf16.msra.mxu0 %v1672_v34  ;;  %p1743_p13 = pneg %p1742_p12  ;;  %p1748_p1 = scmp.lt.s32.totalorder %s1746_s26, %s1740_s9 }
  0x20   : > { %781 = vmatpush1.bf16.msra.mxu1 %v1673_v35  ;;  %709 = vmatprep.subr.bf16.mxu0 %v1674_v36 }
  0x21   : > { %342 = vadd.xlane.f32.xlu0 %v1924_v4  ;;  %782 = vmatprep.subr.bf16.mxu1 %v1676_v37  ;;  %p1749_p2 = por %p1748_p1, %p1747_p0 }
  0x23   : > { %344 = vadd.xlane.f32.xlu1 %v1928_v5  ;;  %710 = vmatpush1.bf16.msra.mxu0 %v1678_v38  ;;  %p1750_p3 = pnand %p1749_p2, %p1743_p13 }
  0x24   : > { %783 = vmatpush1.bf16.msra.mxu1 %v1679_v39  ;;  %711 = vmatprep.subr.bf16.mxu0 %v1680_v40 }
  0x25   : > { %375 = vadd.xlane.f32.xlu0 %v365_v6  ;;  %784 = vmatprep.subr.bf16.mxu1 %v1682_v41  ;;  %v2086_v41 = vld [vmem:[%s2353_s1] ss:$0 sm:$0xff] }
  0x27   : > { %377 = vadd.xlane.f32.xlu1 %v366_v7  ;;  %712 = vmatpush1.bf16.msra.mxu0 %v1684_v42 }
  0x28   : > { %785 = vmatpush1.bf16.msra.mxu1 %v1685_v43  ;;  %713 = vmatprep.subr.bf16.mxu0 %v1686_v44 }
  0x29   : > { %346 = vadd.xlane.f32.xlu0 %v1937_v8  ;;  %786 = vmatprep.subr.bf16.mxu1 %v1688_v45 }
  0x2b   : > { %348 = vadd.xlane.f32.xlu1 %v1940_v9  ;;  %714 = vmatpush1.bf16.msra.mxu0 %v1690_v46 }
  0x2c   : > { %787 = vmatpush1.bf16.msra.mxu1 %v1691_v47  ;;  %1520 = vmatprep.subr.bf16.mxu0 %v1692_v49 }
  0x2d   : > { %379 = vadd.xlane.f32.xlu0 %v367_v14  ;;  %1560 = vmatprep.subr.bf16.mxu1 %v1694_v50 }
  0x2f   : > { %381 = vadd.xlane.f32.xlu1 %v368_v17 }
  0x31   : > { %350 = vadd.xlane.f32.xlu0 %v1973_v20 }
  0x33   : > { %352 = vadd.xlane.f32.xlu1 %v1976_v21 }
  0x35   : > { %383 = vadd.xlane.f32.xlu0 %v369_v26 }
  0x37   : > { %385 = vadd.xlane.f32.xlu1 %v370_v27 }
  0xa6   : > { %v339_v51 = vpop.xlane.xlu0 %338 }
  0xa7   : > { %v355_v52 = vmul.f32 0.0078125, %v339_v51 }
  0xa8   : > { %v372_v53 = vpop.xlane.xlu1 %371 }
  0xa9   : > { %v395_v54 = vmul.f32 %v355_v52, %v355_v52  ;;  %v387_v55 = vmul.f32 0.0078125, %v372_v53  ;;  %v419_v30 = vsub.f32 %v1913_v0, %v355_v52 }
  0xaa   : > { %v341_v56 = vpop.xlane.xlu0 %340 }
  0xab   : > { %v403_v57 = vsub.f32 %v387_v55, %v395_v54  ;;  %v356_v58 = vmul.f32 0.0078125, %v341_v56  ;;  %v2097_v54 = vld [vmem:[%s2354_s2] ss:$0 sm:$0xff] }
  0xac   : > { %v374_v59 = vpop.xlane.xlu1 %373 }
  0xad   : > { %v411_v60 = vmax.f32 %v403_v57, 0.0  ;;  %v396_v61 = vmul.f32 %v356_v58, %v356_v58  ;;  %v388_v62 = vmul.f32 0.0078125, %v374_v59  ;;  %v420_v0 = vsub.f32 %v1916_v1, %v356_v58 }
  0xae   : > { %v343_v63 = vpop.xlane.xlu0 %342 }
  0xaf   : > { %v427_v2 = vadd.f32 1e-05, %v411_v60  ;;  %v404_v3 = vsub.f32 %v388_v62, %v396_v61  ;;  %v2066_v6 = vmul.f32 0.0078125, %v343_v63 }
  0xb0   : > { %v345_v7 = vpop.xlane.xlu1 %344 }
  0xb1   : > { %1724 = vrsqrt.f32 %v427_v2  ;;  %v412_v10 = vmax.f32 %v404_v3, 0.0  ;;  %v397_v11 = vmul.f32 %v2066_v6, %v2066_v6  ;;  %v2070_v12 = vmul.f32 0.0078125, %v345_v7 }
  0xb2   : > { %v376_v13 = vpop.xlane.xlu0 %375  ;;  %v421_v59 = vsub.f32 %v1924_v4, %v2066_v6  ;;  %v1693_v4 = vld [vmem:[%s2357_s5] sm:$0xff]  }
  0xb3   : > { %v428_v14 = vadd.f32 1e-05, %v412_v10  ;;  %v389_v15 = vmul.f32 0.0078125, %v376_v13  ;;  %v398_v17 = vmul.f32 %v2070_v12, %v2070_v12  ;;  %v422_v10 = vsub.f32 %v1928_v5, %v2070_v12  ;;  %v1695_v6 = vld [vmem:[%s2357_s5 + $0x80] sm:$0xff]   ;;  %v1698_v5 = vld [vmem:[%s2357_s5 + $0xc8] sm:$0xff]  }
  0xb4   : > { %v378_v16 = vpop.xlane.xlu1 %377 }
  0xb5   : > { %1726 = vrsqrt.f32 %v428_v14  ;;  %v405_v18 = vsub.f32 %v389_v15, %v397_v11  ;;  %v390_v19 = vmul.f32 0.0078125, %v378_v16 }
  0xb6   : > { %v347_v22 = vpop.xlane.xlu0 %346 }
  0xb7   : > { %v413_v23 = vmax.f32 %v405_v18, 0.0  ;;  %v406_v24 = vsub.f32 %v390_v19, %v398_v17  ;;  %v2074_v25 = vmul.f32 0.0078125, %v347_v22  ;;  %v1696_v17 = vld [vmem:[%s2357_s5 + $0x48] sm:$0xff]  }
  0xb8   : > { %v349_v26 = vpop.xlane.xlu1 %348 }
  0xb9   : > { %v429_v27 = vadd.f32 1e-05, %v413_v23  ;;  %v414_v28 = vmax.f32 %v406_v24, 0.0  ;;  %v399_v29 = vmul.f32 %v2074_v25, %v2074_v25  ;;  %v2079_v31 = vmul.f32 0.0078125, %v349_v26  ;;  %v1697_v24 = vld [vmem:[%s2357_s5 + $0x8] sm:$0xff]  }
  0xba   : > { %v380_v32 = vpop.xlane.xlu0 %379  ;;  %v1699_v26 = vld [vmem:[%s2357_s5 + $0x88] sm:$0xff]  }
  0xbb   : > { %v1725_v33 = vpop.eup %1724  ;;  %1728 = vrsqrt.f32 %v429_v27  ;;  %v430_v34 = vadd.f32 1e-05, %v414_v28  ;;  %v391_v35 = vmul.f32 0.0078125, %v380_v32  ;;  %v400_v38 = vmul.f32 %v2079_v31, %v2079_v31  ;;  %v1700_v28 = vld [vmem:[%s2357_s5 + $0x50] sm:$0xff]  }
  0xbc   : > { %v382_v36 = vpop.xlane.xlu1 %381  ;;  %v443_v37 = vmul.f32 %v1725_v33, %v419_v30  ;;  %v423_v30 = vsub.f32 %v1937_v8, %v2074_v25  ;;  %v1703_v8 = vld [vmem:[%s2357_s5 + $0x90] sm:$0xff]  }
  0xbd   : > { %1730 = vrsqrt.f32 %v430_v34  ;;  %v407_v39 = vsub.f32 %v391_v35, %v399_v29  ;;  %v392_v40 = vmul.f32 0.0078125, %v382_v36  ;;  %v1702_v29 = vld [vmem:[%s2357_s5 + $0xd0] sm:$0xff]   ;;  %v424_v35 = vsub.f32 %v1940_v9, %v2079_v31  ;;  %v1706_v9 = vld [vmem:[%s2357_s5 + $0xd8] sm:$0xff]  }
  0xbe   : > { %v351_v42 = vpop.xlane.xlu0 %350  ;;  %v458_v50 = vmul.f32 %v2086_v41, %v443_v37 }
  0xbf   : > { %v1727_v43 = vpop.eup %1726  ;;  %v415_v44 = vmax.f32 %v407_v39, 0.0  ;;  %v408_v45 = vsub.f32 %v392_v40, %v400_v38  ;;  %v2089_v46 = vmul.f32 0.0078125, %v351_v42  ;;  %v1701_v38 = vld [vmem:[%s2357_s5 + $0x10] sm:$0xff]   ;;  %v1704_v39 = vld [vmem:[%s2357_s5 + $0x58] sm:$0xff]  }
  0xc0   : > { %v353_v47 = vpop.xlane.xlu1 %352  ;;  %v444_v49 = vmul.f32 %v1727_v43, %v420_v0  ;;  %v473_v61 = vadd.f32 %v2097_v54, %v458_v50  ;;  %v1705_v42 = vld [vmem:[%s2357_s5 + $0x18] sm:$0xff]  }
  0xc1   : > { %v431_v51 = vadd.f32 1e-05, %v415_v44  ;;  %v416_v52 = vmax.f32 %v408_v45, 0.0  ;;  %v401_v53 = vmul.f32 %v2089_v46, %v2089_v46  ;;  %v2099_v1 = vmul.f32 0.0078125, %v353_v47  ;;  %v1707_v43 = vld [vmem:[%s2357_s5 + $0x98] sm:$0xff]   ;;  %v1708_v44 = vld [vmem:[%s2357_s5 + $0x60] sm:$0xff]  }
  0xc2   : > { %v384_v55 = vpop.xlane.xlu0 %383  ;;  %v459_v56 = vmul.f32 %v2086_v41, %v444_v49  ;;  %v1710_v45 = vld [vmem:[%s2357_s5 + $0xe0] sm:$0xff]   ;;  %v425_v47 = vsub.f32 %v1973_v20, %v2089_v46 }
  0xc3   : > { %1732 = vrsqrt.f32 %v431_v51  ;;  %v432_v57 = vadd.f32 1e-05, %v416_v52  ;;  %v393_v58 = vmul.f32 0.0078125, %v384_v55  ;;  %v402_v2 = vmul.f32 %v2099_v1, %v2099_v1  ;;  %v1711_v20 = vld [vmem:[%s2357_s5 + $0xa0] sm:$0xff]  }
  0xc4   : > { %v386_v60 = vpop.xlane.xlu1 %385  ;;  %v474_v62 = vadd.f32 %v2097_v54, %v459_v56  ;;  %v426_v52 = vsub.f32 %v1976_v21, %v2099_v1  ;;  %v1709_v56 = vld [vmem:[%s2357_s5 + $0x20] sm:$0xff]   ;;  %v1714_v21 = vld [vmem:[%s2357_s5 + $0xe8] sm:$0xff]  }
  0xc5   : > { %v1729_v63 = vpop.eup %1728  ;;  %1734 = vrsqrt.f32 %v432_v57  ;;  %v409_v3 = vsub.f32 %v393_v58, %v401_v53  ;;  %v394_v7 = vmul.f32 0.0078125, %v386_v60  ;;  %v1712_v57 = vld [vmem:[%s2357_s5 + $0x68] sm:$0xff]  }
  0xc6   : > { %v481_v11 = vpack.c.bf16 %v474_v62, %v473_v61  ;;  %v445_v13 = vmul.f32 %v1729_v63, %v421_v59  ;;  %v1713_v60 = vld [vmem:[%s2357_s5 + $0x28] sm:$0xff]  }
  0xc7   : > { %v1731_v14 = vpop.eup %1730  ;;  %v417_v15 = vmax.f32 %v409_v3, 0.0  ;;  %v410_v16 = vsub.f32 %v394_v7, %v402_v2  ;;  %v1718_v2 = vld [vmem:[%s2357_s5 + $0xf0] sm:$0xff]   ;;  %v1720_v7 = vld [vmem:[%s2357_s5 + $0x78] sm:$0xff]  }
  0xc8   : > { %732 = vmatmul.mubr.bf16.vlgmr.msra.gmra.mrb[0].mxu0 %v481_v11  ;;  %805 = vmatmul.mubr.bf16.vlgmr.msra.gmra.mrb[0].mxu1 %v481_v11  ;;  %v446_v12 = vmul.f32 %v1731_v14, %v422_v10  ;;  %v460_v18 = vmul.f32 %v2086_v41, %v445_v13  ;;  %v1719_v3 = vld [vmem:[%s2357_s5 + $0xb0] sm:$0xff]   ;;  %v1722_v10 = vld [vmem:[%s2357_s5 + $0xf8] sm:$0xff]   ;;  %v1286_v14 = vld [vmem:[%s326_s21] sm:$0xff] }
  0xc9   : > { %v433_v19 = vadd.f32 1e-05, %v417_v15  ;;  %v418_v22 = vmax.f32 %v410_v16, 0.0  ;;  %741 = vmatprep.mubr.bf16.mxu0 %v1804_v48  ;;  %814 = vmatprep.mubr.bf16.mxu1 %v1804_v48  ;;  %v1721_v11 = vld [vmem:[%s2357_s5 + $0x38] sm:$0xff]   ;;  %v1290_v16 = vld [vmem:[%s326_s21 + $0x20] sm:$0xff] }
  0xca   : > { %v461_v23 = vmul.f32 %v2086_v41, %v446_v12  ;;  %1521 = vmatpush3.bf16.msra.mxu0 %v1693_v4  ;;  %1561 = vmatpush3.bf16.msra.mxu1 %v1695_v6  ;;  %v475_v32 = vadd.f32 %v2097_v54, %v460_v18  ;;  %v1723_v13 = vld [vmem:[%s2357_s5 + $0xb8] sm:$0xff]   ;;  %v1287_v4 = vld [vmem:[%s326_s21 + $0x8] sm:$0xff]  ;;  %v1288_v6 = vld [vmem:[%s326_s21 + $0x10] sm:$0xff]  ;;  %v519_v18 = vlaneseq }
  0xcb   : > { %1736 = vrsqrt.f32 %v433_v19  ;;  %v434_v27 = vadd.f32 1e-05, %v418_v22  ;;  %1522 = vmatprep.subr.bf16.mxu0 %v1696_v17  ;;  %1562 = vmatprep.subr.bf16.mxu1 %v1698_v5  ;;  %v1289_v15 = vld [vmem:[%s326_s21 + $0x18] sm:$0xff]  ;;  %v1291_v17 = vld [vmem:[%s326_s21 + $0x28] sm:$0xff]  ;;  %v1292_v5 = vld [vmem:[%s326_s21 + $0x30] sm:$0xff] }
  0xcc   : > { %v476_v33 = vadd.f32 %v2097_v54, %v461_v23  ;;  %1301 = vperm.xlu1 %1643, %v1287_v4   ;;  %1296 = vperm.xlu0 %1642, %v1286_v14   ;;  %v1293_v12 = vld [vmem:[%s326_s21 + $0x38] sm:$0xff]  ;;  %v520_v19 = vshrl.u32 %v519_v18, 7  ;;  %s2311_s21 = scalar_lea.sflag [#allocation3], %s313_s12 }
  0xcd   : > { %v1733_v34 = vpop.eup %1732  ;;  %1738 = vrsqrt.f32 %v434_v27 }
  0xce   : > { %v482_v36 = vpack.c.bf16 %v476_v33, %v475_v32  ;;  %v447_v37 = vmul.f32 %v1733_v34, %v423_v30  ;;  %1523 = vmatpush3.bf16.msra.mxu0 %v1697_v24  ;;  %1563 = vmatpush3.bf16.msra.mxu1 %v1699_v26  ;;  %v521_v22 = vsub.s32 0, %v520_v19  ;;  %v529_v23 = vsub.s32 2, %v520_v19  ;;  %v517_v24 = vld [vmem:[%s2356_s4] sm:$0xf] }
  0xcf   : > { %v1735_v25 = vpop.eup %1734  ;;  %1524 = vmatprep.subr.bf16.mxu0 %v1700_v28  ;;  %1564 = vmatprep.subr.bf16.mxu1 %v1702_v29  ;;  %v525_v26 = vsub.s32 1, %v520_v19  ;;  %v533_v27 = vsub.s32 3, %v520_v19 }
  0xd0   : > { %742 = vmatmul.mubr.bf16.gmra.mrb[4].mxu0 %v482_v36  ;;  %815 = vmatmul.mubr.bf16.gmra.mrb[4].mxu1 %v482_v36  ;;  %v448_v31 = vmul.f32 %v1735_v25, %v424_v35  ;;  %v462_v40 = vmul.f32 %v2086_v41, %v447_v37  ;;  %v2234_v28 = vrot.slane %v517_v24, %v521_v22 }
  0xd1   : > { %751 = vmatprep.mubr.bf16.mxu0 %v1804_v48  ;;  %824 = vmatprep.mubr.bf16.mxu1 %v1804_v48  ;;  %v2236_v29 = vrot.slane %v517_v24, %v529_v23  ;;  %v2238_v30 = vrot.slane %v517_v24, %v525_v26  ;;  %v2240_v32 = vrot.slane %v517_v24, %v533_v27 }
  0xd2   : > { %v463_v0 = vmul.f32 %v2086_v41, %v448_v31  ;;  %1525 = vmatpush3.bf16.msra.mxu0 %v1701_v38  ;;  %1565 = vmatpush3.bf16.msra.mxu1 %v1703_v8  ;;  %v477_v49 = vadd.f32 %v2097_v54, %v462_v40 }
  0xd3   : > { %1526 = vmatprep.subr.bf16.mxu0 %v1704_v39  ;;  %1566 = vmatprep.subr.bf16.mxu1 %v1706_v9 }
  0xd4   : > { %v478_v50 = vadd.f32 %v2097_v54, %v463_v0  ;;  %1306 = vperm.xlu1 %1643, %v1288_v6  }
  0xd5   : > { %v1737_v51 = vpop.eup %1736 }
  0xd6   : > { %v483_v53 = vpack.c.bf16 %v478_v50, %v477_v49  ;;  %v449_v55 = vmul.f32 %v1737_v51, %v425_v47  ;;  %1527 = vmatpush3.bf16.msra.mxu0 %v1705_v42  ;;  %1567 = vmatpush3.bf16.msra.mxu1 %v1707_v43 }
  0xd7   : > { %v1739_v46 = vpop.eup %1738  ;;  %1528 = vmatprep.subr.bf16.mxu0 %v1708_v44  ;;  %1568 = vmatprep.subr.bf16.mxu1 %v1710_v45 }
  0xd8   : > { %752 = vmatmul.mubr.bf16.gmra.mrb[8].mxu0 %v483_v53  ;;  %825 = vmatmul.mubr.bf16.gmra.mrb[8].mxu1 %v483_v53  ;;  %v450_v1 = vmul.f32 %v1739_v46, %v426_v52  ;;  %v464_v58 = vmul.f32 %v2086_v41, %v449_v55 }
  0xd9   : > { %761 = vmatprep.mubr.bf16.mxu0 %v1804_v48  ;;  %834 = vmatprep.mubr.bf16.mxu1 %v1804_v48  ;;  %v1715_v48 = vld [vmem:[%s2357_s5 + $0xa8] sm:$0xff]  }
  0xda   : > { %v465_v59 = vmul.f32 %v2086_v41, %v450_v1  ;;  %1529 = vmatpush3.bf16.msra.mxu0 %v1709_v56  ;;  %1569 = vmatpush3.bf16.msra.mxu1 %v1711_v20  ;;  %v479_v61 = vadd.f32 %v2097_v54, %v464_v58  ;;  %v1716_v41 = vld [vmem:[%s2357_s5 + $0x70] sm:$0xff]  }
  0xdb   : > { %1530 = vmatprep.subr.bf16.mxu0 %v1712_v57  ;;  %1570 = vmatprep.subr.bf16.mxu1 %v1714_v21 }
  0xdc   : > { %v480_v62 = vadd.f32 %v2097_v54, %v465_v59  ;;  %v1717_v54 = vld [vmem:[%s2357_s5 + $0x30] sm:$0xff]   ;;  %1311 = vperm.xlu1 %1643, %v1289_v15  }
  0xde   : > { %v484_v63 = vpack.c.bf16 %v480_v62, %v479_v61  ;;  %1531 = vmatpush3.bf16.msra.mxu0 %v1713_v60  ;;  %1571 = vmatpush3.bf16.msra.mxu1 %v1715_v48 }
  0xdf   : > { %1532 = vmatprep.subr.bf16.mxu0 %v1716_v41  ;;  %1572 = vmatprep.subr.bf16.mxu1 %v1718_v2 }
  0xe0   : > { %762 = vmatmul.mubr.bf16.gmra.mrb[12].mxu0 %v484_v63  ;;  %835 = vmatmul.mubr.bf16.gmra.mrb[12].mxu1 %v484_v63 }
  0xe1   : > { %1316 = vperm.xlu1 %1643, %v1290_v16  }
  0xe2   : > { %1533 = vmatpush3.bf16.msra.mxu0 %v1717_v54  ;;  %1573 = vmatpush3.bf16.msra.mxu1 %v1719_v3 }
  0xe3   : > { %1534 = vmatprep.subr.bf16.mxu0 %v1720_v7  ;;  %1574 = vmatprep.subr.bf16.mxu1 %v1722_v10 }
  0xe5   : > { %1321 = vperm.xlu1 %1643, %v1291_v17  }
  0xe6   : > { %1535 = vmatpush3.bf16.msra.mxu0 %v1721_v11  ;;  %1575 = vmatpush3.bf16.msra.mxu1 %v1723_v13 }
  0xe9   : > { %1326 = vperm.xlu1 %1643, %v1292_v5  }
  0xed   : > { %1331 = vperm.xlu1 %1643, %v1293_v12  }
 0x19b   : > { %v733_v33 = vpop.f32.mrb[0].mxu0  ;;  %v806_v34 = vpop.f32.mrb[0].mxu1 }
 0x19c   : > { %v734_v35 = vadd.f32 %v733_v33, %v2234_v28  ;;  %v807_v36 = vadd.f32 %v806_v34, %v2236_v29  ;;  %v735_v37 = vpop.f32.mrb[1].mxu0  ;;  %v808_v38 = vpop.f32.mrb[1].mxu1 }
 0x19d   : > { %v736_v8 = vadd.f32 %v735_v37, %v2238_v30  ;;  %v809_v25 = vadd.f32 %v808_v38, %v2240_v32  ;;  %v737_v39 = vpop.f32.mrb[2].mxu0  ;;  %v810_v9 = vpop.f32.mrb[2].mxu1 }
 0x19e   : > { %v738_v31 = vadd.f32 %v737_v39, %v2234_v28  ;;  %v811_v40 = vadd.f32 %v810_v9, %v2236_v29  ;;  %v739_v0 = vpop.f32.mrb[3].mxu0  ;;  %v812_v42 = vpop.f32.mrb[3].mxu1  ;;  %v845_v45 = vmax.f32 %v734_v35, 0.0  ;;  %v847_v47 = vmax.f32 %v807_v36, 0.0 }
 0x19f   : > { %v740_v43 = vadd.f32 %v739_v0, %v2238_v30  ;;  %v813_v44 = vadd.f32 %v812_v42, %v2240_v32  ;;  %v846_v51 = vmax.f32 %v736_v8, 0.0  ;;  %v848_v52 = vmax.f32 %v809_v25, 0.0 }
 0x1a0   : > { %v849_v49 = vmax.f32 %v738_v31, 0.0  ;;  %v851_v50 = vmax.f32 %v811_v40, 0.0 }
 0x1a1   : > { %v850_v53 = vmax.f32 %v740_v43, 0.0  ;;  %v852_v55 = vmax.f32 %v813_v44, 0.0 }
 0x1a2   : > { %v877_v56 = vpack.c.bf16 %v849_v49, %v845_v45  ;;  %v879_v20 = vpack.c.bf16 %v851_v50, %v847_v47 }
 0x1a3   : > { %v878_v46 = vpack.c.bf16 %v850_v53, %v846_v51  ;;  %v880_v57 = vpack.c.bf16 %v852_v55, %v848_v52  ;;  %v743_v21 = vpop.f32.mrb[4].mxu0  ;;  %v816_v1 = vpop.f32.mrb[4].mxu1 }
 0x1a4   : > { %v744_v58 = vadd.f32 %v743_v21, %v2234_v28  ;;  %v817_v59 = vadd.f32 %v816_v1, %v2236_v29  ;;  %v745_v60 = vpop.f32.mrb[5].mxu0  ;;  %v818_v61 = vpop.f32.mrb[5].mxu1 }
 0x1a5   : > { %v746_v62 = vadd.f32 %v745_v60, %v2238_v30  ;;  %v819_v63 = vadd.f32 %v818_v61, %v2240_v32  ;;  %v747_v48 = vpop.f32.mrb[6].mxu0  ;;  %v820_v41 = vpop.f32.mrb[6].mxu1  ;;  %1188 = vmatprep.mubr.bf16.mxu0 %v878_v46  ;;  %1253 = vmatprep.mubr.bf16.mxu1 %v880_v57 }
 0x1a6   : > { %v748_v2 = vadd.f32 %v747_v48, %v2234_v28  ;;  %v821_v54 = vadd.f32 %v820_v41, %v2236_v29  ;;  %v749_v3 = vpop.f32.mrb[7].mxu0  ;;  %v822_v7 = vpop.f32.mrb[7].mxu1  ;;  %1189 = vmatmul.mubr.bf16.vlgmr.msra.gmra.mrb[16].mxu0 %v877_v56  ;;  %1254 = vmatmul.mubr.bf16.vlgmr.msra.gmra.mrb[16].mxu1 %v879_v20  ;;  %v853_v13 = vmax.f32 %v744_v58, 0.0  ;;  %v855_v4 = vmax.f32 %v817_v59, 0.0 }
 0x1a7   : > { %v750_v10 = vadd.f32 %v749_v3, %v2238_v30  ;;  %v823_v11 = vadd.f32 %v822_v7, %v2240_v32  ;;  %v854_v15 = vmax.f32 %v746_v62, 0.0  ;;  %v856_v16 = vmax.f32 %v819_v63, 0.0 }
 0x1a8   : > { %v857_v6 = vmax.f32 %v748_v2, 0.0  ;;  %v859_v14 = vmax.f32 %v821_v54, 0.0 }
 0x1a9   : > { %v858_v17 = vmax.f32 %v750_v10, 0.0  ;;  %v860_v5 = vmax.f32 %v823_v11, 0.0 }
 0x1aa   : > { %v881_v12 = vpack.c.bf16 %v857_v6, %v853_v13  ;;  %v883_v18 = vpack.c.bf16 %v859_v14, %v855_v4 }
 0x1ab   : > { %v882_v19 = vpack.c.bf16 %v858_v17, %v854_v15  ;;  %v884_v22 = vpack.c.bf16 %v860_v5, %v856_v16  ;;  %v753_v23 = vpop.f32.mrb[8].mxu0  ;;  %v826_v24 = vpop.f32.mrb[8].mxu1 }
 0x1ac   : > { %v754_v26 = vadd.f32 %v753_v23, %v2234_v28  ;;  %v827_v27 = vadd.f32 %v826_v24, %v2236_v29  ;;  %v755_v33 = vpop.f32.mrb[9].mxu0  ;;  %v828_v34 = vpop.f32.mrb[9].mxu1 }
 0x1ad   : > { %v756_v35 = vadd.f32 %v755_v33, %v2238_v30  ;;  %v829_v36 = vadd.f32 %v828_v34, %v2240_v32  ;;  %v757_v37 = vpop.f32.mrb[10].mxu0  ;;  %v830_v38 = vpop.f32.mrb[10].mxu1  ;;  %1196 = vmatprep.mubr.bf16.mxu0 %v882_v19  ;;  %1261 = vmatprep.mubr.bf16.mxu1 %v884_v22 }
 0x1ae   : > { %v758_v8 = vadd.f32 %v757_v37, %v2234_v28  ;;  %v831_v25 = vadd.f32 %v830_v38, %v2236_v29  ;;  %v759_v39 = vpop.f32.mrb[11].mxu0  ;;  %v832_v9 = vpop.f32.mrb[11].mxu1  ;;  %1197 = vmatmul.mubr.bf16.gmra.mrb[20].mxu0 %v881_v12  ;;  %1262 = vmatmul.mubr.bf16.gmra.mrb[20].mxu1 %v883_v18  ;;  %v861_v0 = vmax.f32 %v754_v26, 0.0  ;;  %v863_v42 = vmax.f32 %v827_v27, 0.0  ;;  %v2277_v18 = vld [vmem:[%s2358_s6] ss:$0 sm:$0xff] }
 0x1af   : > { %v760_v31 = vadd.f32 %v759_v39, %v2238_v30  ;;  %v833_v40 = vadd.f32 %v832_v9, %v2240_v32  ;;  %v862_v45 = vmax.f32 %v756_v35, 0.0  ;;  %v864_v47 = vmax.f32 %v829_v36, 0.0  ;;  %v1297_v38 = vpop.permute.xlu0 %1296 }
 0x1b0   : > { %v865_v43 = vmax.f32 %v758_v8, 0.0  ;;  %v867_v44 = vmax.f32 %v831_v25, 0.0 }
 0x1b1   : > { %v866_v49 = vmax.f32 %v760_v31, 0.0  ;;  %v868_v50 = vmax.f32 %v833_v40, 0.0 }
 0x1b2   : > { %v885_v51 = vpack.c.bf16 %v865_v43, %v861_v0  ;;  %v887_v52 = vpack.c.bf16 %v867_v44, %v863_v42 }
 0x1b3   : > { %v886_v53 = vpack.c.bf16 %v866_v49, %v862_v45  ;;  %v888_v55 = vpack.c.bf16 %v868_v50, %v864_v47  ;;  %v763_v56 = vpop.f32.mrb[12].mxu0  ;;  %v836_v20 = vpop.f32.mrb[12].mxu1 }
 0x1b4   : > { %v764_v46 = vadd.f32 %v763_v56, %v2234_v28  ;;  %v837_v57 = vadd.f32 %v836_v20, %v2236_v29  ;;  %v765_v21 = vpop.f32.mrb[13].mxu0  ;;  %v838_v1 = vpop.f32.mrb[13].mxu1 }
 0x1b5   : > { %v766_v58 = vadd.f32 %v765_v21, %v2238_v30  ;;  %v839_v59 = vadd.f32 %v838_v1, %v2240_v32  ;;  %v767_v60 = vpop.f32.mrb[14].mxu0  ;;  %v840_v61 = vpop.f32.mrb[14].mxu1  ;;  %1204 = vmatprep.mubr.bf16.mxu0 %v886_v53  ;;  %1269 = vmatprep.mubr.bf16.mxu1 %v888_v55 }
 0x1b6   : > { %v768_v62 = vadd.f32 %v767_v60, %v2234_v28  ;;  %v841_v63 = vadd.f32 %v840_v61, %v2236_v29  ;;  %v769_v48 = vpop.f32.mrb[15].mxu0  ;;  %v842_v41 = vpop.f32.mrb[15].mxu1  ;;  %1205 = vmatmul.mubr.bf16.gmra.mrb[24].mxu0 %v885_v51  ;;  %1270 = vmatmul.mubr.bf16.gmra.mrb[24].mxu1 %v887_v52  ;;  %v869_v3 = vmax.f32 %v764_v46, 0.0  ;;  %v871_v7 = vmax.f32 %v837_v57, 0.0 }
 0x1b7   : > { %v770_v2 = vadd.f32 %v769_v48, %v2238_v30  ;;  %v843_v54 = vadd.f32 %v842_v41, %v2240_v32  ;;  %v870_v13 = vmax.f32 %v766_v58, 0.0  ;;  %v872_v4 = vmax.f32 %v839_v59, 0.0  ;;  %v1302_v30 = vpop.permute.xlu1 %1301 }
 0x1b8   : > { %v873_v10 = vmax.f32 %v768_v62, 0.0  ;;  %v875_v11 = vmax.f32 %v841_v63, 0.0 }
 0x1b9   : > { %v874_v6 = vmax.f32 %v770_v2, 0.0  ;;  %v876_v14 = vmax.f32 %v843_v54, 0.0 }
 0x1ba   : > { %v889_v15 = vpack.c.bf16 %v873_v10, %v869_v3  ;;  %v891_v28 = vpack.c.bf16 %v875_v11, %v871_v7 }
 0x1bb   : > { %v890_v29 = vpack.c.bf16 %v874_v6, %v870_v13  ;;  %v892_v16 = vpack.c.bf16 %v876_v14, %v872_v4  ;;  %v1307_v17 = vpop.permute.xlu1 %1306 }
 0x1bd   : > { %1212 = vmatprep.mubr.bf16.mxu0 %v890_v29  ;;  %1277 = vmatprep.mubr.bf16.mxu1 %v892_v16 }
 0x1be   : > { %1213 = vmatmul.mubr.bf16.gmra.mrb[28].mxu0 %v889_v15  ;;  %1278 = vmatmul.mubr.bf16.gmra.mrb[28].mxu1 %v891_v28 }
 0x1bf   : > { %v1312_v32 = vpop.permute.xlu1 %1311 }
 0x1c3   : > { %v1317_v39 = vpop.permute.xlu1 %1316 }
 0x1c7   : > { %v1322_v57 = vpop.permute.xlu1 %1321 }
 0x1cb   : > { %v1327_v6 = vpop.permute.xlu1 %1326 }
 0x279   : > { %v1536_v5 = vpop.f32.mrb[16].mxu0  ;;  %v1576_v12 = vpop.f32.mrb[16].mxu1 }
 0x27a   : > { %v1537_v19 = vpop.f32.mrb[17].mxu0  ;;  %v1577_v22 = vpop.f32.mrb[17].mxu1 }
 0x27b   : > { %v1538_v23 = vadd.f32 %v1537_v19, %v1536_v5  ;;  %v1578_v24 = vadd.f32 %v1577_v22, %v1576_v12  ;;  %v1539_v26 = vpop.f32.mrb[18].mxu0  ;;  %v1579_v27 = vpop.f32.mrb[18].mxu1 }
 0x27c   : > { %v1540_v33 = vpop.f32.mrb[19].mxu0  ;;  %v1580_v34 = vpop.f32.mrb[19].mxu1 }
 0x27d   : > { %v1191_v35 = vadd.f32 %v1538_v23, %v2277_v18  ;;  %v1541_v36 = vadd.f32 %v1540_v33, %v1539_v26  ;;  %v1581_v37 = vadd.f32 %v1580_v34, %v1579_v27 }
 0x27f   : > { %v1194_v8 = vadd.f32 %v1541_v36, %v2277_v18  ;;  %v1256_v25 = vadd.f32 %v1578_v24, %v1191_v35 }
 0x281   : > { %v1259_v9 = vadd.f32 %v1581_v37, %v1194_v8  ;;  %v1334_v31 = vmul.f32 %v1297_v38, %v1256_v25  ;;  %v1542_v40 = vpop.f32.mrb[20].mxu0  ;;  %v1582_v0 = vpop.f32.mrb[20].mxu1 }
 0x282   : > { %v1543_v42 = vpop.f32.mrb[21].mxu0  ;;  %v1583_v43 = vpop.f32.mrb[21].mxu1 }
 0x283   : > { %v1335_v44 = vmul.f32 %v1302_v30, %v1259_v9  ;;  %1342 = vst [vmem:[%s2284_s19] sm:$0xff] %v1334_v31  ;;  %v1544_v45 = vadd.f32 %v1543_v42, %v1542_v40  ;;  %v1584_v47 = vadd.f32 %v1583_v43, %v1582_v0  ;;  %v1545_v49 = vpop.f32.mrb[22].mxu0  ;;  %v1585_v50 = vpop.f32.mrb[22].mxu1 }
 0x284   : > { %v1546_v51 = vpop.f32.mrb[23].mxu0  ;;  %v1586_v52 = vpop.f32.mrb[23].mxu1 }
 0x285   : > { %1343 = vst [vmem:[%s2284_s19 + $0x8] sm:$0xff] %v1335_v44  ;;  %v1199_v53 = vadd.f32 %v1544_v45, %v2277_v18  ;;  %v1547_v55 = vadd.f32 %v1546_v51, %v1545_v49  ;;  %v1587_v56 = vadd.f32 %v1586_v52, %v1585_v50  ;;  %v1332_v37 = vpop.permute.xlu1 %1331 }
 0x287   : > { %v1264_v20 = vadd.f32 %v1584_v47, %v1199_v53  ;;  %v1202_v46 = vadd.f32 %v1547_v55, %v2277_v18 }
 0x289   : > { %v1336_v21 = vmul.f32 %v1307_v17, %v1264_v20  ;;  %v1267_v1 = vadd.f32 %v1587_v56, %v1202_v46  ;;  %v1548_v58 = vpop.f32.mrb[24].mxu0  ;;  %v1588_v59 = vpop.f32.mrb[24].mxu1 }
 0x28a   : > { %v1549_v60 = vpop.f32.mrb[25].mxu0  ;;  %v1589_v61 = vpop.f32.mrb[25].mxu1 }
 0x28b   : > { %1344 = vst [vmem:[%s2284_s19 + $0x10] sm:$0xff] %v1336_v21  ;;  %v1337_v62 = vmul.f32 %v1312_v32, %v1267_v1  ;;  %v1550_v63 = vadd.f32 %v1549_v60, %v1548_v58  ;;  %v1590_v48 = vadd.f32 %v1589_v61, %v1588_v59  ;;  %v1551_v41 = vpop.f32.mrb[26].mxu0  ;;  %v1591_v2 = vpop.f32.mrb[26].mxu1 }
 0x28c   : > { %v1552_v54 = vpop.f32.mrb[27].mxu0  ;;  %v1592_v3 = vpop.f32.mrb[27].mxu1 }
 0x28d   : > { %1345 = vst [vmem:[%s2284_s19 + $0x18] sm:$0xff] %v1337_v62  ;;  %v1207_v7 = vadd.f32 %v1550_v63, %v2277_v18  ;;  %v1553_v10 = vadd.f32 %v1552_v54, %v1551_v41  ;;  %v1593_v11 = vadd.f32 %v1592_v3, %v1591_v2 }
 0x28f   : > { %v1272_v13 = vadd.f32 %v1590_v48, %v1207_v7  ;;  %v1210_v4 = vadd.f32 %v1553_v10, %v2277_v18 }
 0x291   : > { %v1338_v14 = vmul.f32 %v1317_v39, %v1272_v13  ;;  %v1275_v15 = vadd.f32 %v1593_v11, %v1210_v4  ;;  %v1554_v28 = vpop.f32.mrb[28].mxu0  ;;  %v1594_v29 = vpop.f32.mrb[28].mxu1 }
 0x292   : > { %v1555_v16 = vpop.f32.mrb[29].mxu0  ;;  %v1595_v30 = vpop.f32.mrb[29].mxu1 }
 0x293   : > { %1346 = vst [vmem:[%s2284_s19 + $0x20] sm:$0xff] %v1338_v14  ;;  %v1339_v17 = vmul.f32 %v1322_v57, %v1275_v15  ;;  %v1556_v32 = vadd.f32 %v1555_v16, %v1554_v28  ;;  %v1596_v5 = vadd.f32 %v1595_v30, %v1594_v29  ;;  %v1557_v12 = vpop.f32.mrb[30].mxu0  ;;  %v1597_v19 = vpop.f32.mrb[30].mxu1 }
 0x294   : > { %v1558_v22 = vpop.f32.mrb[31].mxu0  ;;  %v1598_v23 = vpop.f32.mrb[31].mxu1 }
 0x295   : > { %1347 = vst [vmem:[%s2284_s19 + $0x28] sm:$0xff] %v1339_v17  ;;  %v1215_v24 = vadd.f32 %v1556_v32, %v2277_v18  ;;  %v1559_v26 = vadd.f32 %v1558_v22, %v1557_v12  ;;  %v1599_v27 = vadd.f32 %v1598_v23, %v1597_v19 }
 0x297   : > { %v1280_v33 = vadd.f32 %v1596_v5, %v1215_v24  ;;  %v1218_v34 = vadd.f32 %v1559_v26, %v2277_v18 }
 0x299   : > { %v1340_v35 = vmul.f32 %v1327_v6, %v1280_v33  ;;  %v1283_v36 = vadd.f32 %v1599_v27, %v1218_v34 }
 0x29b   : > { %1348 = vst [vmem:[%s2284_s19 + $0x30] sm:$0xff] %v1340_v35  ;;  %v1341_v38 = vmul.f32 %v1332_v37, %v1283_v36 }
 0x29d   : > { %1349 = vst [vmem:[%s2284_s19 + $0x38] sm:$0xff] %v1341_v38 }
 0x29e   : > { %1753 = shalt.err (!%p1750_p3)
}
 0x29f   : > { %s1754_s10 = scalar_lea.hbm %s2303_s25, 1024  ;;  %s1758_s19 = scalar_lea.hbm %s2360_s8, 8192 }
 0x2a0   : > { %p1755_p4 = scmp.ne.s32.totalorder %s2303_s25, %s1754_s10  ;;  %p1759_p9 = scmp.lt.u32.totalorder %s2303_s25, %s2360_s8 }
 0x2a1   : > { %p1760_p10 = scmp.lt.u32.totalorder %s1758_s19, %s1754_s10  ;;  %p1762_p12 = scmp.lt.u32.totalorder %s1754_s10, %s2303_s25 }
 0x2a2   : > { %p1756_p7 = pnand %p1755_p4, %p1891_p5 }
 0x2a3   : > { %p1761_p11 = por %p1760_p10, %p1759_p9 }
 0x2a4   : > { %p1757_p8 = pneg %p1756_p7 }
 0x2a5   : > { %p1763_p13 = por %p1762_p12, %p1761_p11 }
 0x2a7   : > { %p1764_p0 = pnand %p1763_p13, %p1757_p8 }
 0x2a9   : > { %1767 = shalt.err (!%p1764_p0)
}
 0x2aa   : > { %s1806_s24 = smov 128   ;;  %s1807_s9 = smov 8  }
 0x2ab   : > { %1600 = dma.vmem_to_hbm [thread:$0]  (%p1891_p5), %s2305_s22, 1024, %s2303_s25, %s2311_s21, %s1806_s24, %s1806_s24, %s1807_s9  }
 0x2ac PF: > { %p1606_p1 = scmp.ge.s32.totalorder %s1802_s30, 2  ;;  %s1379_s17 = sand.u32 1, %s1790_s27  }
 0x2ad   : > { %s1380_s18 = scalar_lea.sflag [#allocation3], %s1379_s17 }
 0x2ae   : > { %p1603_p2 = pnand %p1606_p1, %p1895_p6 }
 0x2b0   : > { %1785 = dma.done.wait (!%p1603_p2), %s1380_s18, 1024  }
 0x2b1   : > { %1787 = vsyncadd (!%p1603_p2), %s1380_s18, 4294966272  ;;  %p18_p3 = scmp.ge.s32.totalorder %s1878_s11, 10   ;;  %s2363_s27 = smov %s1794_s28 }
 0x2b2   : > { %s2364_s28 = smov %s1798_s29  ;;  %s2365_s29 = smov %s1889_s14 }
 0x2b3   : > { %s2366_s30 = smov %s1878_s11  ;;  %20 = sbr.rel (!%p18_p3) target bundleno = 3 (0x3), region = 90 }
 0x2ba   :  { %1385 = vsyncpa [#allocation3], 1 }
 0x2bb   :  { %1387 = vsyncpa [#allocation3 + $0x1], 1 }

</bundles_post_ra>
